<compile_context>
chip_gen: v7x
topology: tpu7x:2x2x1
jax: 0.10.0
libtpu: 0.0.40
codegen_flags: <defaults>
</compile_context>

<pallas_src>
import math
from functools import partial

import jax
import jax.numpy as jnp
from jax import lax
from jax.experimental import pallas as pl
from jax.experimental.pallas import tpu as pltpu


def _downsample_rows_kernel(xm_ref, xh_ref, wa_ref, wb_ref, wc_ref, wd_ref,
                            b_ref, o_ref, *, rows_per_step, approximate_gelu):
    """Computes `rows_per_step` output image-rows of Conv2d(C,C,3,s=2,p=1) + GELU.

    xm_ref: (T, Wo+1, 4C)  phase-packed rows [j*T, j*T+T)    (space-to-depth)
    xh_ref: (Wo+1, 4C)     phase-packed row j*T+T            (1-row halo)
    wa_ref: (4C, Cout_p)   taps (0,0),(0,1),(1,0),(1,1) stacked along K
    wb_ref: (4C, Cout_p)   taps (0,2),(1,2) at K-slots 0 and 2C; zeros elsewhere
    wc_ref: (2C, Cout_p)   taps (2,0),(2,1) stacked along K
    wd_ref: (2C, Cout_p)   tap  (2,2) at K-slot 0; zeros elsewhere
    b_ref:  (1, Cout_p)
    o_ref:  (T, Wo, Cout_p)
    """
    _, wp1, c4 = xm_ref.shape
    c2 = c4 // 2
    wo = wp1 - 1

    wa = wa_ref[...]
    wb = wb_ref[...]
    wc = wc_ref[...]
    wd = wd_ref[...]
    bias = b_ref[...]

    for t in range(rows_per_step):                     # static unrolled row loop
        row0 = xm_ref[t]                                               # phase row h
        row1 = xm_ref[t + 1] if t + 1 < rows_per_step else xh_ref[...]  # phase row h+1

        # Four merged-K MXU matmuls replace the nine per-tap K=C matmuls.
        acc = jnp.dot(row0[0:wo, :], wa, preferred_element_type=jnp.float32)
        acc = acc + jnp.dot(row0[1:wo + 1, :], wb, preferred_element_type=jnp.float32)
        acc = acc + jnp.dot(row1[0:wo, 0:c2], wc, preferred_element_type=jnp.float32)
        acc = acc + jnp.dot(row1[1:wo + 1, 0:c2], wd, preferred_element_type=jnp.float32)
        acc = acc + bias

        if approximate_gelu:
            # tanh GELU: transcendental goes to the otherwise-idle EUP slot.
            c0 = jnp.float32(0.7978845608028654)   # sqrt(2/pi)
            y = 0.5 * acc * (1.0 + jnp.tanh(c0 * (acc + 0.044715 * acc * acc * acc)))
        else:
            # Exact GELU (torch.nn.GELU default): 0.5 * x * (1 + erf(x / sqrt(2)))
            y = 0.5 * acc * (1.0 + lax.erf(acc * jnp.float32(0.7071067811865476)))
        o_ref[t] = y.astype(o_ref.dtype)


def downsampling_forward(x_nchw, weight, bias, *, rows_per_step=None,
                         compute_dtype=jnp.float32, approximate_gelu=False):
    """Forward pass of DownSampling.

    x_nchw: (N, C, H, W) float32
    weight: (Cout, Cin, 3, 3) float32 (PyTorch Conv2d layout)
    bias:   (Cout,) float32
    returns (N, Cout, ceil(H/2), ceil(W/2)) float32
    """
    N, C, H, W = x_nchw.shape
    Cout = weight.shape[0]
    Ho = (H - 1) // 2 + 1
    Wo = (W - 1) // 2 + 1
    Cout_p = max(128, ((Cout + 127) // 128) * 128)     # lane-dense output channels

    # ---- pick output-rows-per-grid-step (amortize ~0.35us/step, bound VMEM) ------
    itemsize = jnp.dtype(compute_dtype).itemsize
    if rows_per_step is None:
        in_row = (Wo + 1) * 4 * C * itemsize
        out_row = Wo * Cout_p * 4
        budget = 6 << 20                               # block bytes, pre double-buffer
        T = int(max(1, min(Ho, 8, budget // max(1, 2 * (in_row + out_row)))))
        # keep >= ~8 grid steps so v7x's two TensorCores both stay busy
        while T > 1 and N * ((Ho + T - 1) // T) < 8:
            T = max(1, T // 2)
    else:
        T = int(max(1, min(rows_per_step, Ho)))
    n_row_blocks = (Ho + T - 1) // T
    Ho_pad = n_row_blocks * T

    # ---- glue: NCHW -> NHWC, zero-pad, space-to-depth phase packing --------------
    # xs[n, r, c, (2*dr+dc)*C + ci] = x_padded[n, 2r+dr, 2c+dc, ci]
    x_nhwc = jnp.transpose(x_nchw, (0, 2, 3, 1))                       # (N, H, W, C)
    Hp, Wp = 2 * (Ho_pad + 1), 2 * (Wo + 1)
    xp = jnp.pad(x_nhwc, ((0, 0), (1, Hp - H - 1), (1, Wp - W - 1), (0, 0)))
    xs = xp.reshape(N, Ho_pad + 1, 2, Wo + 1, 2, C)
    xs = jnp.transpose(xs, (0, 1, 3, 2, 4, 5)).reshape(N, Ho_pad + 1, Wo + 1, 4 * C)
    xs = xs.astype(compute_dtype)

    # ---- weights: restack the 9 taps into 4 merged-K blocks (K = 4C,4C,2C,2C) ----
    wt = jnp.transpose(weight, (2, 3, 1, 0))                           # (3, 3, C, Cout)
    zero = jnp.zeros((C, Cout), weight.dtype)
    w_a = jnp.concatenate([wt[0, 0], wt[0, 1], wt[1, 0], wt[1, 1]], axis=0)   # (4C, Cout)
    w_b = jnp.concatenate([wt[0, 2], zero, wt[1, 2], zero], axis=0)           # (4C, Cout)
    w_c = jnp.concatenate([wt[2, 0], wt[2, 1]], axis=0)                       # (2C, Cout)
    w_d = jnp.concatenate([wt[2, 2], zero], axis=0)                           # (2C, Cout)
    pad_c = Cout_p - Cout
    w_a, w_b, w_c, w_d = [jnp.pad(w, ((0, 0), (0, pad_c))).astype(compute_dtype)
                          for w in (w_a, w_b, w_c, w_d)]
    b_row = jnp.pad(bias, (0, pad_c)).astype(jnp.float32).reshape(1, Cout_p)

    # ---- VMEM budget hint (blocks double-buffered; weights counted twice) --------
    est = (2 * ((T + 1) * (Wo + 1) * 4 * C * itemsize + T * Wo * Cout_p * 4)
           + 2 * (12 * C * Cout_p * itemsize + Cout_p * 4) + (1 << 20))
    vmem_limit = int(min(max(est, 32 << 20), 64 << 20))

    # ---- Pallas kernel: 4 merged-K matmuls + bias + GELU, T rows per step --------
    out = pl.pallas_call(
        partial(_downsample_rows_kernel, rows_per_step=T,
                approximate_gelu=approximate_gelu),
        out_shape=jax.ShapeDtypeStruct((N, Ho_pad, Wo, Cout_p), jnp.float32),
        grid=(N, n_row_blocks),
        in_specs=[
            # main block: T phase rows [j*T, j*T+T)
            pl.BlockSpec((None, T, Wo + 1, 4 * C), lambda n, j: (n, j, 0, 0)),
            # 1-row halo: phase row (j+1)*T (block size 1 -> element-level index)
            pl.BlockSpec((None, None, Wo + 1, 4 * C),
                         lambda n, j: (n, (j + 1) * T, 0, 0)),
            # merged weights / bias: constant index maps -> resident in VMEM
            pl.BlockSpec((4 * C, Cout_p), lambda n, j: (0, 0)),
            pl.BlockSpec((4 * C, Cout_p), lambda n, j: (0, 0)),
            pl.BlockSpec((2 * C, Cout_p), lambda n, j: (0, 0)),
            pl.BlockSpec((2 * C, Cout_p), lambda n, j: (0, 0)),
            pl.BlockSpec((1, Cout_p), lambda n, j: (0, 0)),
        ],
        out_specs=pl.BlockSpec((None, T, Wo, Cout_p), lambda n, j: (n, j, 0, 0)),
        compiler_params=pltpu.CompilerParams(
            dimension_semantics=("parallel", "parallel"),
            vmem_limit_bytes=vmem_limit),
    )(xs, xs, w_a, w_b, w_c, w_d, b_row)

    # ---- glue: strip row/channel padding (no-ops when already aligned), to NCHW --
    if Ho_pad != Ho:
        out = out[:, :Ho]
    if Cout_p != Cout:
        out = out[..., :Cout]
    return jnp.transpose(out, (0, 3, 1, 2))                            # (N, Cout, Ho, Wo)


def _reference_forward(x_nchw, weight, bias):
    """Pure-JAX reference (lax conv + exact GELU) for a correctness check."""
    y = lax.conv_general_dilated(
        x_nchw, weight,
        window_strides=(2, 2),
        padding=((1, 1), (1, 1)),
        dimension_numbers=("NCHW", "OIHW", "NCHW"),
    ) + bias.reshape(1, -1, 1, 1)
    return jax.nn.gelu(y, approximate=False)


if __name__ == "__main__":
    # Small deterministic example consistent with the module: C channels in == out.
    N, C, H, W = 2, 4, 16, 16

    key = jax.random.PRNGKey(0)
    kx, kw, kb = jax.random.split(key, 3)

    x = jax.random.normal(kx, (N, C, H, W), dtype=jnp.float32)

    # Deterministic init mimicking PyTorch Conv2d default (uniform +-1/sqrt(fan_in)).
    fan_in = C * 3 * 3
    bound = 1.0 / math.sqrt(fan_in)
    weight = jax.random.uniform(kw, (C, C, 3, 3), minval=-bound, maxval=bound,
                                dtype=jnp.float32)
    bias = jax.random.uniform(kb, (C,), minval=-bound, maxval=bound, dtype=jnp.float32)

    out = jax.block_until_ready(downsampling_forward(x, weight, bias))
    ref = jax.block_until_ready(_reference_forward(x, weight, bias))

    Ho, Wo = (H - 1) // 2 + 1, (W - 1) // 2 + 1
    assert out.shape == (N, C, Ho, Wo), out.shape
    assert jnp.allclose(out, ref, atol=1e-5, rtol=1e-5), float(jnp.max(jnp.abs(out - ref)))

    print("KERNEL_OK")
</pallas_src>

<mosaic_0001>
module attributes {stable_mosaic.version = 11 : i64} {
  func.func @_downsample_rows_kernel(%arg0: i32, %arg1: i32, %arg2: memref<1x2x9x16xf32, #tpu.memory_space<vmem>>, %arg3: memref<1x1x9x16xf32, #tpu.memory_space<vmem>>, %arg4: memref<16x128xf32, #tpu.memory_space<vmem>>, %arg5: memref<16x128xf32, #tpu.memory_space<vmem>>, %arg6: memref<8x128xf32, #tpu.memory_space<vmem>>, %arg7: memref<8x128xf32, #tpu.memory_space<vmem>>, %arg8: memref<1x128xf32, #tpu.memory_space<vmem>>, %arg9: memref<1x2x8x128xf32, #tpu.memory_space<vmem>>) attributes {dimension_semantics = [#tpu.dimension_semantics<parallel>, #tpu.dimension_semantics<parallel>], iteration_bounds = array<i64: 2, 4>, scalar_prefetch = 0 : i64, scratch_operands = 0 : i64, tpu.core_type = #tpu.core_type<tc>, window_params = [{transform_indices = @transform_0, window_bounds = array<i64: 1, 2, 9, 16>}, {transform_indices = @transform_1, window_bounds = array<i64: 1, 1, 9, 16>}, {pipeline_mode = #tpu.pipeline_mode<synchronous>, transform_indices = @transform_2, window_bounds = array<i64: 16, 128>}, {pipeline_mode = #tpu.pipeline_mode<synchronous>, transform_indices = @transform_3, window_bounds = array<i64: 16, 128>}, {pipeline_mode = #tpu.pipeline_mode<synchronous>, transform_indices = @transform_4, window_bounds = array<i64: 8, 128>}, {pipeline_mode = #tpu.pipeline_mode<synchronous>, transform_indices = @transform_5, window_bounds = array<i64: 8, 128>}, {pipeline_mode = #tpu.pipeline_mode<synchronous>, transform_indices = @transform_6, window_bounds = array<i64: 1, 128>}, {transform_indices = @transform_7, window_bounds = array<i64: 1, 2, 8, 128>}]} {
    %c0 = arith.constant 0 : index
    %c0_0 = arith.constant 0 : index
    %0 = vector.load %arg4[%c0, %c0_0] : memref<16x128xf32, #tpu.memory_space<vmem>>, vector<16x128xf32>
    %c0_1 = arith.constant 0 : index
    %c0_2 = arith.constant 0 : index
    %1 = vector.load %arg5[%c0_1, %c0_2] : memref<16x128xf32, #tpu.memory_space<vmem>>, vector<16x128xf32>
    %c0_3 = arith.constant 0 : index
    %c0_4 = arith.constant 0 : index
    %2 = vector.load %arg6[%c0_3, %c0_4] : memref<8x128xf32, #tpu.memory_space<vmem>>, vector<8x128xf32>
    %c0_5 = arith.constant 0 : index
    %c0_6 = arith.constant 0 : index
    %3 = vector.load %arg7[%c0_5, %c0_6] : memref<8x128xf32, #tpu.memory_space<vmem>>, vector<8x128xf32>
    %c0_7 = arith.constant 0 : index
    %c0_8 = arith.constant 0 : index
    %4 = vector.load %arg8[%c0_7, %c0_8] : memref<1x128xf32, #tpu.memory_space<vmem>>, vector<1x128xf32>
    %c0_9 = arith.constant 0 : index
    %c0_10 = arith.constant 0 : index
    %c0_11 = arith.constant 0 : index
    %c0_12 = arith.constant 0 : index
    %5 = vector.load %arg2[%c0_9, %c0_10, %c0_11, %c0_12] : memref<1x2x9x16xf32, #tpu.memory_space<vmem>>, vector<1x1x9x16xf32>
    %6 = vector.shape_cast %5 : vector<1x1x9x16xf32> to vector<9x16xf32>
    %c0_13 = arith.constant 0 : index
    %c1 = arith.constant 1 : index
    %c0_14 = arith.constant 0 : index
    %c0_15 = arith.constant 0 : index
    %7 = vector.load %arg2[%c0_13, %c1, %c0_14, %c0_15] : memref<1x2x9x16xf32, #tpu.memory_space<vmem>>, vector<1x1x9x16xf32>
    %8 = vector.shape_cast %7 : vector<1x1x9x16xf32> to vector<9x16xf32>
    %9 = vector.extract_strided_slice %6 {offsets = [0, 0], sizes = [8, 16], strides = [1, 1]} : vector<9x16xf32> to vector<8x16xf32>
    %cst = arith.constant dense<0.000000e+00> : vector<8x128xf32>
    %10 = tpu.matmul %9, %0, %cst {dimension_numbers = #tpu.dot_dimension_numbers<[1], [0], [0], [1], [0, 0, 1, 1], [], []>} : vector<8x16xf32>, vector<16x128xf32>, vector<8x128xf32> -> vector<8x128xf32>
    %11 = vector.extract_strided_slice %6 {offsets = [1, 0], sizes = [8, 16], strides = [1, 1]} : vector<9x16xf32> to vector<8x16xf32>
    %cst_16 = arith.constant dense<0.000000e+00> : vector<8x128xf32>
    %12 = tpu.matmul %11, %1, %cst_16 {dimension_numbers = #tpu.dot_dimension_numbers<[1], [0], [0], [1], [0, 0, 1, 1], [], []>} : vector<8x16xf32>, vector<16x128xf32>, vector<8x128xf32> -> vector<8x128xf32>
    %13 = arith.addf %10, %12 : vector<8x128xf32>
    %14 = vector.extract_strided_slice %8 {offsets = [0, 0], sizes = [8, 8], strides = [1, 1]} : vector<9x16xf32> to vector<8x8xf32>
    %cst_17 = arith.constant dense<0.000000e+00> : vector<8x128xf32>
    %15 = tpu.matmul %14, %2, %cst_17 {dimension_numbers = #tpu.dot_dimension_numbers<[1], [0], [0], [1], [0, 0, 1, 1], [], []>} : vector<8x8xf32>, vector<8x128xf32>, vector<8x128xf32> -> vector<8x128xf32>
    %16 = arith.addf %13, %15 : vector<8x128xf32>
    %17 = vector.extract_strided_slice %8 {offsets = [1, 0], sizes = [8, 8], strides = [1, 1]} : vector<9x16xf32> to vector<8x8xf32>
    %cst_18 = arith.constant dense<0.000000e+00> : vector<8x128xf32>
    %18 = tpu.matmul %17, %3, %cst_18 {dimension_numbers = #tpu.dot_dimension_numbers<[1], [0], [0], [1], [0, 0, 1, 1], [], []>} : vector<8x8xf32>, vector<8x128xf32>, vector<8x128xf32> -> vector<8x128xf32>
    %19 = arith.addf %16, %18 : vector<8x128xf32>
    %20 = vector.broadcast %4 : vector<1x128xf32> to vector<8x128xf32>
    %21 = arith.addf %19, %20 : vector<8x128xf32>
    %cst_19 = arith.constant 5.000000e-01 : f32
    %22 = vector.broadcast %cst_19 : f32 to vector<8x128xf32>
    %23 = arith.mulf %22, %21 : vector<8x128xf32>
    %cst_20 = arith.constant 0.707106769 : f32
    %24 = vector.broadcast %cst_20 : f32 to vector<8x128xf32>
    %25 = arith.mulf %21, %24 : vector<8x128xf32>
    %26 = math.erf %25 : vector<8x128xf32>
    %cst_21 = arith.constant 1.000000e+00 : f32
    %27 = vector.broadcast %cst_21 : f32 to vector<8x128xf32>
    %28 = arith.addf %27, %26 : vector<8x128xf32>
    %29 = arith.mulf %23, %28 : vector<8x128xf32>
    %c0_22 = arith.constant 0 : index
    %c0_23 = arith.constant 0 : index
    %c0_24 = arith.constant 0 : index
    %c0_25 = arith.constant 0 : index
    %30 = vector.load %arg9[%c0_22, %c0_23, %c0_24, %c0_25] : memref<1x2x8x128xf32, #tpu.memory_space<vmem>>, vector<1x1x8x128xf32>
    %31 = vector.shape_cast %30 : vector<1x1x8x128xf32> to vector<8x128xf32>
    %32 = vector.shape_cast %29 : vector<8x128xf32> to vector<1x1x8x128xf32>
    tpu.vector_store %arg9[%c0_22, %c0_23, %c0_24, %c0_25], %32 {strides = array<i32>} : memref<1x2x8x128xf32, #tpu.memory_space<vmem>>, vector<1x1x8x128xf32>,
    %c0_26 = arith.constant 0 : index
    %c1_27 = arith.constant 1 : index
    %c0_28 = arith.constant 0 : index
    %c0_29 = arith.constant 0 : index
    %33 = vector.load %arg2[%c0_26, %c1_27, %c0_28, %c0_29] : memref<1x2x9x16xf32, #tpu.memory_space<vmem>>, vector<1x1x9x16xf32>
    %34 = vector.shape_cast %33 : vector<1x1x9x16xf32> to vector<9x16xf32>
    %c0_30 = arith.constant 0 : index
    %c0_31 = arith.constant 0 : index
    %c0_32 = arith.constant 0 : index
    %c0_33 = arith.constant 0 : index
    %35 = vector.load %arg3[%c0_30, %c0_31, %c0_32, %c0_33] : memref<1x1x9x16xf32, #tpu.memory_space<vmem>>, vector<1x1x9x16xf32>
    %36 = vector.shape_cast %35 : vector<1x1x9x16xf32> to vector<9x16xf32>
    %37 = vector.extract_strided_slice %34 {offsets = [0, 0], sizes = [8, 16], strides = [1, 1]} : vector<9x16xf32> to vector<8x16xf32>
    %cst_34 = arith.constant dense<0.000000e+00> : vector<8x128xf32>
    %38 = tpu.matmul %37, %0, %cst_34 {dimension_numbers = #tpu.dot_dimension_numbers<[1], [0], [0], [1], [0, 0, 1, 1], [], []>} : vector<8x16xf32>, vector<16x128xf32>, vector<8x128xf32> -> vector<8x128xf32>
    %39 = vector.extract_strided_slice %34 {offsets = [1, 0], sizes = [8, 16], strides = [1, 1]} : vector<9x16xf32> to vector<8x16xf32>
    %cst_35 = arith.constant dense<0.000000e+00> : vector<8x128xf32>
    %40 = tpu.matmul %39, %1, %cst_35 {dimension_numbers = #tpu.dot_dimension_numbers<[1], [0], [0], [1], [0, 0, 1, 1], [], []>} : vector<8x16xf32>, vector<16x128xf32>, vector<8x128xf32> -> vector<8x128xf32>
    %41 = arith.addf %38, %40 : vector<8x128xf32>
    %42 = vector.extract_strided_slice %36 {offsets = [0, 0], sizes = [8, 8], strides = [1, 1]} : vector<9x16xf32> to vector<8x8xf32>
    %cst_36 = arith.constant dense<0.000000e+00> : vector<8x128xf32>
    %43 = tpu.matmul %42, %2, %cst_36 {dimension_numbers = #tpu.dot_dimension_numbers<[1], [0], [0], [1], [0, 0, 1, 1], [], []>} : vector<8x8xf32>, vector<8x128xf32>, vector<8x128xf32> -> vector<8x128xf32>
    %44 = arith.addf %41, %43 : vector<8x128xf32>
    %45 = vector.extract_strided_slice %36 {offsets = [1, 0], sizes = [8, 8], strides = [1, 1]} : vector<9x16xf32> to vector<8x8xf32>
    %cst_37 = arith.constant dense<0.000000e+00> : vector<8x128xf32>
    %46 = tpu.matmul %45, %3, %cst_37 {dimension_numbers = #tpu.dot_dimension_numbers<[1], [0], [0], [1], [0, 0, 1, 1], [], []>} : vector<8x8xf32>, vector<8x128xf32>, vector<8x128xf32> -> vector<8x128xf32>
    %47 = arith.addf %44, %46 : vector<8x128xf32>
    %48 = vector.broadcast %4 : vector<1x128xf32> to vector<8x128xf32>
    %49 = arith.addf %47, %48 : vector<8x128xf32>
    %cst_38 = arith.constant 5.000000e-01 : f32
    %50 = vector.broadcast %cst_38 : f32 to vector<8x128xf32>
    %51 = arith.mulf %50, %49 : vector<8x128xf32>
    %cst_39 = arith.constant 0.707106769 : f32
    %52 = vector.broadcast %cst_39 : f32 to vector<8x128xf32>
    %53 = arith.mulf %49, %52 : vector<8x128xf32>
    %54 = math.erf %53 : vector<8x128xf32>
    %cst_40 = arith.constant 1.000000e+00 : f32
    %55 = vector.broadcast %cst_40 : f32 to vector<8x128xf32>
    %56 = arith.addf %55, %54 : vector<8x128xf32>
    %57 = arith.mulf %51, %56 : vector<8x128xf32>
    %c0_41 = arith.constant 0 : index
    %c1_42 = arith.constant 1 : index
    %c0_43 = arith.constant 0 : index
    %c0_44 = arith.constant 0 : index
    %58 = vector.load %arg9[%c0_41, %c1_42, %c0_43, %c0_44] : memref<1x2x8x128xf32, #tpu.memory_space<vmem>>, vector<1x1x8x128xf32>
    %59 = vector.shape_cast %58 : vector<1x1x8x128xf32> to vector<8x128xf32>
    %60 = vector.shape_cast %57 : vector<8x128xf32> to vector<1x1x8x128xf32>
    tpu.vector_store %arg9[%c0_41, %c1_42, %c0_43, %c0_44], %60 {strides = array<i32>} : memref<1x2x8x128xf32, #tpu.memory_space<vmem>>, vector<1x1x8x128xf32>,
    return
  }
  func.func @transform_0(%arg0: i32, %arg1: i32) -> (i32, i32, i32, i32) {
    %c0_i32 = arith.constant 0 : i32
    %c0_i32_0 = arith.constant 0 : i32
    %c0_i32_1 = arith.constant 0 : i32
    return %arg0, %arg1, %c0_i32, %c0_i32_0 : i32, i32, i32, i32
  }
  func.func @transform_1(%arg0: i32, %arg1: i32) -> (i32, i32, i32, i32) {
    %c1_i32 = arith.constant 1 : i32
    %0 = arith.addi %arg1, %c1_i32 : i32
    %c2_i32 = arith.constant 2 : i32
    %1 = arith.muli %0, %c2_i32 : i32
    %c0_i32 = arith.constant 0 : i32
    %c0_i32_0 = arith.constant 0 : i32
    %c0_i32_1 = arith.constant 0 : i32
    return %arg0, %1, %c0_i32, %c0_i32_0 : i32, i32, i32, i32
  }
  func.func @transform_2(%arg0: i32, %arg1: i32) -> (i32, i32) {
    %c0_i32 = arith.constant 0 : i32
    %c0_i32_0 = arith.constant 0 : i32
    %c0_i32_1 = arith.constant 0 : i32
    return %c0_i32, %c0_i32_0 : i32, i32
  }
  func.func @transform_3(%arg0: i32, %arg1: i32) -> (i32, i32) {
    %c0_i32 = arith.constant 0 : i32
    %c0_i32_0 = arith.constant 0 : i32
    %c0_i32_1 = arith.constant 0 : i32
    return %c0_i32, %c0_i32_0 : i32, i32
  }
  func.func @transform_4(%arg0: i32, %arg1: i32) -> (i32, i32) {
    %c0_i32 = arith.constant 0 : i32
    %c0_i32_0 = arith.constant 0 : i32
    %c0_i32_1 = arith.constant 0 : i32
    return %c0_i32, %c0_i32_0 : i32, i32
  }
  func.func @transform_5(%arg0: i32, %arg1: i32) -> (i32, i32) {
    %c0_i32 = arith.constant 0 : i32
    %c0_i32_0 = arith.constant 0 : i32
    %c0_i32_1 = arith.constant 0 : i32
    return %c0_i32, %c0_i32_0 : i32, i32
  }
  func.func @transform_6(%arg0: i32, %arg1: i32) -> (i32, i32) {
    %c0_i32 = arith.constant 0 : i32
    %c0_i32_0 = arith.constant 0 : i32
    %c0_i32_1 = arith.constant 0 : i32
    return %c0_i32, %c0_i32_0 : i32, i32
  }
  func.func @transform_7(%arg0: i32, %arg1: i32) -> (i32, i32, i32, i32) {
    %c0_i32 = arith.constant 0 : i32
    %c0_i32_0 = arith.constant 0 : i32
    %c0_i32_1 = arith.constant 0 : i32
    return %arg0, %arg1, %c0_i32, %c0_i32_0 : i32, i32, i32, i32
  }
}

</mosaic_0001>

<bundles_post_ra>
// kernel: tpu_custom_call.1
= control target key start
LH: loop header
LB: loop body
LE: loop exit
PB: predicated region body
PF: predicated region fallthrough
CT: control target
= control target key end

     0   :  { %s1692_s0 = inlined_call_operand.vmem [shape: f32[2,9,9,16], index: 0, kind: input, shape index: {}]   ;;  %s1693_s1 = inlined_call_operand.vmem [shape: f32[2,9,9,16], index: 1, kind: input, shape index: {}]   ;;  %s1694_s2 = inlined_call_operand.vmem [shape: f32[16,128], index: 2, kind: input, shape index: {}]   ;;  %s1695_s3 = inlined_call_operand.vmem [shape: f32[16,128], index: 3, kind: input, shape index: {}]   ;;  %s1696_s4 = inlined_call_operand.vmem [shape: f32[8,128], index: 4, kind: input, shape index: {}]   ;;  %s1697_s5 = inlined_call_operand.vmem [shape: f32[8,128], index: 5, kind: input, shape index: {}]   ;;  %s1698_s6 = inlined_call_operand.vmem [shape: f32[1,128], index: 6, kind: input, shape index: {}]   ;;  %s1699_s7 = inlined_call_operand.hbm [shape: f32[2,8,8,128], index: 7, kind: output, shape index: {}]  }
   0x1   :  { %1700 = sst [smem:[#allocation5_spill]] %s1694_s2 }
   0x2   :  { %1701 = sst [smem:[#allocation6_spill]] %s1695_s3 }
   0x3   :  { %12 = vsyncpa [#allocation3], 0 }
   0x4   :  { %14 = vsyncpa [#allocation3 + $0x1], 0  ;;  %s1489_s24 = smov 0   ;;  %s1491_s25 = smov 0  }
   0x5   :  { %s1493_s26 = smov 0   ;;  %s1495_s27 = smov 0  }
   0x6   :  { %s1497_s28 = smov 0   ;;  %s1499_s29 = smov 0  }
   0x7   :  { %s1501_s30 = smov 0   ;;  %s1503_s8 = smov 0  }
   0x8 LB: > { %s1146_s9 = sadd.s32 4294967295, %s1441_s8   ;;  %s1147_s10 = sadd.s32 4294967294, %s1441_s8   ;;  %s1441_s8 = sphi %s1503_s8, %s20_s8   ;;  %s1437_s30 = sphi %s1501_s30, %s1712_s30   ;;  %s1433_s29 = sphi %s1499_s29, %s1711_s29   ;;  %s1429_s28 = sphi %s1497_s28, %s1710_s28   ;;  %s1425_s27 = sphi %s1495_s27, %s1709_s27   ;;  %s1421_s26 = sphi %s1493_s26, %s1708_s26   ;;  %s1417_s25 = sphi %s1491_s25, %s1707_s25   ;;  %s1413_s24 = sphi %s1489_s24, %s1706_s24  }
   0x9   : > { %s29_s11 = sadd.s32 1, %s1433_s29  ;;  %s32_s12 = sadd.s32 1, %s1437_s30 }
   0xa   : > { %p30_p0 = scmp.ge.s32.totalorder %s29_s11, 4  ;;  %p216_p1 = scmp.ne.s32.totalorder %s1421_s26, %s1417_s25 }
   0xb   : > { %p217_p2 = scmp.eq.s32.totalorder %s1146_s9, 7  ;;  %p222_p5 = scmp.ne.s32.totalorder %s1417_s25, %s1413_s24 }
   0xc   : > { %s1714_s11 = smov (%p30_p0, %s29_s11), 0  ;;  %s1716_s12 = smov (!%p30_p0, %s32_s12), %s1437_s30 }
   0xd   : > { %s202_s13 = ssub.s32 %s1433_s29, %s1714_s11  ;;  %p1540_p3 = por %p217_p2, %p216_p1 }
   0xe   : > { %p34_p4 = scmp.ge.s32.totalorder %s1716_s12, 2  ;;  %p223_p6 = scmp.eq.s32.totalorder %s1147_s10, 7 }
   0xf   : > { %p1152_p7 = scmp.ge.s32.totalorder %s1441_s8, 1  ;;  %p296_p9 = scmp.lt.s32.totalorder %s1441_s8, 9 }
  0x10   : > { %s1718_s12 = smov (%p34_p4, %s1716_s12), 0  ;;  %p1549_p8 = por %p223_p6, %p222_p5 }
  0x11   : > { %s201_s16 = ssub.s32 %s1437_s30, %s1718_s12  ;;  %s206_s17 = sadd.s32 1, %s1421_s26 }
  0x12   : > { %s203_s18 = sor.u32 %s202_s13, %s201_s16  ;;  %p297_p10 = pnand %p1152_p7, %p296_p9 }
  0x13   : > { %p204_p11 = scmp.eq.s32.totalorder %s203_s18, 0  ;;  %s1704_s3 = sld [smem:[#allocation6_spill]] (!%p297_p10)  ;;  %v1443_v3 = vmov (!%p297_p10), 0.0|0.0   ;;  %vm1444_vm0 = vmmov (!%p297_p10), 0   ;;  %v1445_v7 = vmov (!%p297_p10), 0.0   ;;  %vm402_vm1 = vcmask (!%p297_p10), 130048  }
  0x14   : > { %300 = sbr.rel (%p297_p10) target bundleno = 300 (0x12c), region = 48  ;;  %s1705_s2 = sld [smem:[#allocation5_spill]] (!%p297_p10)  ;;  %1254 = vmatprep.subr.bf16.mxu0 (!%p297_p10), %v1443_v3  ;;  %1257 = vmatprep.subr.bf16.mxu1 (!%p297_p10), %v1443_v3  ;;  %v389_v8 = vld [vmem:[%s1697_s5] sm:$0xff] (!%p297_p10)  ;;  %vm398_vm2 = vcmask (!%p297_p10), 1046528   ;;  %vm547_vm3 = vcmask (!%p297_p10), 64512  }
  0x15   : > { %s1558_s19 = scalar_select %p204_p11, %s1421_s26, %s206_s17  }
  0x16   : > { %s1573_s17 = sshll.u32 (!%p297_p10), %s1425_s27, 1  ;;  %p355_p12 = scmp.lt.s32.totalorder (!%p297_p10), %s1429_s28, 1  ;;  %1210 = vmatprep.mubr.msk.f32.mxu0 (!%p297_p10), %vm1444_vm0, %v1445_v7  ;;  %1217 = vmatprep.mubr.msk.f32.mxu1 (!%p297_p10), %vm1444_vm0, %v1445_v7  ;;  %v388_v16 = vld [vmem:[%s1696_s4] sm:$0xff] (!%p297_p10) }
  0x17   : > { %p357_p13 = scmp.lt.s32.totalorder (!%p297_p10), %s1573_s17, 8  ;;  %s1185_s18 = sadd.s32 (!%p297_p10), 2, %s1573_s17  ;;  %v1166_v38 = vld [vmem:[%s1698_s6] ss:$0 sm:$0xff] (!%p297_p10) }
  0x18   : > { %p374_p0 = scmp.lt.s32.totalorder (!%p297_p10), %s1185_s18, 8  ;;  %s346_s13 = sand.u32 (!%p297_p10), 1, %s1417_s25  }
  0x19   : > { %v386_v0 = vld [vmem:[%s1704_s3] sm:$0xff] (!%p297_p10)  ;;  %v387_v1 = vld [vmem:[%s1704_s3 + $0x8] sm:$0xff] (!%p297_p10) }
  0x1a   : > { %v384_v2 = vld [vmem:[%s1705_s2] sm:$0xff] (!%p297_p10)  ;;  %v1255_v4 = vpack.c.bf16 (!%p297_p10), %v387_v1, %v386_v0  ;;  %v385_v5 = vld [vmem:[%s1705_s2 + $0x8] sm:$0xff] (!%p297_p10) }
  0x1b   : > { %v1258_v6 = vpack.c.bf16 %v385_v5, %v384_v2  ;;  %s1583_s20 = scalar_select %p355_p12, %s1429_s28, 1 }
  0x1c   : > { %1256 = vmatpush3.bf16.msra.mxu0 %v1255_v4  ;;  %s358_s27 = scalar_select %p357_p13, %s1573_s17, 8 }
  0x1d   : > { %1259 = vmatpush3.bf16.msra.mxu1 %v1258_v6  ;;  %1220 = vmatprep.subr.mxu0 %v1445_v7  ;;  %s1266_s21 = smul.u32 18, %s1583_s20  ;;  %s1720_s18 = smov (!%p374_p0, %s1185_s18), 8 }
  0x1e   : > { %1225 = vmatprep.subr.mxu1 %v1445_v7  ;;  %s1155_s22 = sshll.u32 %s358_s27, 1  ;;  %s1158_s2 = sshll.u32 %s1720_s18, 1 }
  0x1f   : > { %s361_s23 = sadd.s32 %s1266_s21, %s1155_s22  ;;  %s378_s3 = sadd.s32 %s1266_s21, %s1158_s2 }
  0x20   : > { %s1156_s9 = sshll.u32 %s361_s23, 3  ;;  %s1159_s22 = sshll.u32 %s378_s3, 3 }
  0x21   : > { %s363_s16 = scalar_lea.vmem %s1692_s0, %s1156_s9  ;;  %s380_s10 = scalar_lea.vmem %s1693_s1, %s1159_s22 }
  0x22   : > { %v391_v9 = vld [vmem:[%s363_s16] sm:$0xff]  ;;  %v392_v10 = vld [vmem:[%s363_s16 + $0x8] sm:$0x1]  ;;  %v1160_v11 = vld [vmem:[%s363_s16 + $0x10] sm:$0xff]  ;;  %s1176_s20 = sshll.u32 %s1429_s28, 3  ;;  %s1640_s28 = scalar_lea.sflag [#allocation3], %s346_s13 }
  0x23   : > { %v399_v12 = vrot.slane %v391_v9, 1  ;;  %v400_v13 = vrot.slane %v392_v10, 1  ;;  %1218 = vmatmul.mubr.msk.f32.vlgmr.msra.gmra.mrb[0].mxu1 %vm402_vm1, %v391_v9  ;;  %v623_v14 = vrot.slane %v1160_v11, 1  ;;  %v1161_v15 = vld [vmem:[%s363_s16 + $0x18] sm:$0x1]  ;;  %v714_v22 = vld [vmem:[%s380_s10] sm:$0xff]  ;;  %s1037_s27 = sadd.s32 %s1176_s20, %s1573_s17 }
  0x24   : > { %1226 = vmatpush3.msra.mxu1 %v389_v8  ;;  %1227 = vmatprep.mubr.msk.f32.mxu1 %vm1444_vm0, %v1445_v7  ;;  %v624_v17 = vrot.slane %v1161_v15, 1  ;;  %v1168_v18 = vld [vmem:[%s363_s16 + $0x18] sm:$0x1]  ;;  %v715_v23 = vld [vmem:[%s380_s10 + $0x8] sm:$0x1]  ;;  %v940_v24 = vrot.slane %v714_v22, 1 }
  0x25   : > { %v401_v19 = vsel %vm398_vm2, %v399_v12, %v400_v13  ;;  %1263 = vmatprep.subr.bf16.mxu1 %v1443_v3  ;;  %v719_v21 = vrot.slane %v1168_v18, 1  ;;  %v941_v25 = vrot.slane %v715_v23, 1  ;;  %s1153_s16 = sshll.u32 %s346_s13, 4  ;;  %s1177_s3 = sshll.u32 %s1037_s27, 7 }
  0x26   : > { %1211 = vmatmul.mubr.msk.f32.vlgmr.msra.gmra.mrb[0].mxu0 %vm402_vm1, %v401_v19  ;;  %v625_v20 = vsel %vm398_vm2, %v623_v14, %v624_v17  ;;  %s348_s2 = scalar_lea.vmem [#allocation2], %s1153_s16  ;;  %s1636_s10 = scalar_lea.hbm %s1699_s7, %s1177_s3 }
  0x27   : > { %1221 = vmatpush3.msra.mxu0 %v388_v16  ;;  %1222 = vmatprep.mubr.msk.f32.mxu0 %vm1444_vm0, %v1445_v7  ;;  %v720_v26 = vsel %vm398_vm2, %v623_v14, %v719_v21  ;;  %v942_v27 = vsel %vm398_vm2, %v940_v24, %v941_v25  ;;  %s1040_s22 = sshll.u32 %s348_s2, 4  ;;  %s1446_s18 = smov [#allocation2]   ;;  %s1638_s22 = int_to_ptr.vmem [resolvable:$true] %s1040_s22 }
  0x28   : > { %1260 = vmatprep.subr.bf16.mxu0 %v1443_v3  ;;  %1228 = vmatmul.mubr.msk.f32.vlgmr.msra.gmra.mrb[2].mxu1 %vm547_vm3, %v625_v20  ;;  %s1347_s17 = scalar_lea.vmem %s1638_s22, 256  ;;  %s1351_s21 = sshll.u32 %s1446_s18, 4  ;;  %s1352_s21 = int_to_ptr.vmem [resolvable:$false] %s1351_s21 }
  0x29   : > { %1265 = vmatpush3.bf16.msra.mxu1 %v1258_v6  ;;  %1241 = vmatprep.mubr.msk.f32.mxu1 %vm1444_vm0, %v1445_v7  ;;  %p1348_p1 = scmp.ne.s32.totalorder %s1638_s22, %s1347_s17  ;;  %s1353_s16 = scalar_lea.vmem %s1352_s21, 512 }
  0x2a   : > { %1223 = vmatmul.mubr.msk.f32.vlgmr.msra.gmra.mrb[2].mxu0 %vm547_vm3, %v1160_v11  ;;  %1249 = vmatprep.subr.mxu1 %v1445_v7  ;;  %p1354_p5 = scmp.lt.s32.totalorder %s1638_s22, %s1352_s21  ;;  %p1355_p6 = scmp.lt.s32.totalorder %s1353_s16, %s1347_s17 }
  0x2b   : > { %1262 = vmatpush3.bf16.msra.mxu0 %v1255_v4  ;;  %1234 = vmatprep.mubr.msk.f32.mxu0 %vm1444_vm0, %v1445_v7  ;;  %p1349_p2 = pnand %p1348_p1, %p1540_p3 }
  0x2c   : > { %1244 = vmatprep.subr.mxu0 %v1445_v7  ;;  %1242 = vmatmul.mubr.msk.f32.vlgmr.msra.gmra.mrb[4].mxu1 %vm402_vm1, %v1160_v11  ;;  %p1356_p7 = por %p1355_p6, %p1354_p5 }
  0x2d   : > { %1250 = vmatpush3.msra.mxu1 %v389_v8  ;;  %1251 = vmatprep.mubr.msk.f32.mxu1 %vm1444_vm0, %v1445_v7  ;;  %p1350_p4 = pneg %p1349_p2 }
  0x2e   : > { %1235 = vmatmul.mubr.msk.f32.vlgmr.msra.gmra.mrb[4].mxu0 %vm402_vm1, %v720_v26 }
  0x2f   : > { %1245 = vmatpush3.msra.mxu0 %v388_v16  ;;  %1246 = vmatprep.mubr.msk.f32.mxu0 %vm1444_vm0, %v1445_v7  ;;  %p1357_p9 = pnand %p1356_p7, %p1350_p4 }
  0x30   : > { %1252 = vmatmul.mubr.msk.f32.vlgmr.msra.gmra.mrb[6].mxu1 %vm547_vm3, %v942_v27 }
  0x32   : > { %1247 = vmatmul.mubr.msk.f32.vlgmr.msra.gmra.mrb[6].mxu0 %vm547_vm3, %v714_v22 }
  0xf6   : > { %v543_v28 = vpop.f32.mrb[0].mxu1 }
  0xf7   : > { %v1219_v29 = vpop.f32.mrb[1].mxu1 }
  0xf9   : > { %v471_v30 = vpop.f32.mrb[0].mxu0 }
  0xfa   : > { %v544_v31 = vadd.f32 %v543_v28, %v471_v30  ;;  %v1212_v32 = vpop.f32.mrb[1].mxu0 }
  0xfb   : > { %v694_v33 = vpop.f32.mrb[2].mxu1 }
  0xfc   : > { %v1229_v34 = vpop.f32.mrb[3].mxu1 }
  0xfd   : > { %v617_v35 = vpop.f32.mrb[2].mxu0 }
  0xfe   : > { %v621_v36 = vadd.f32 %v617_v35, %v544_v31  ;;  %v1224_v37 = vpop.f32.mrb[3].mxu0 }
  0xff   : > { %v861_v39 = vpop.f32.mrb[4].mxu1 }
 0x100   : > { %v698_v40 = vadd.f32 %v694_v33, %v621_v36  ;;  %v1243_v41 = vpop.f32.mrb[5].mxu1 }
 0x101   : > { %v789_v42 = vpop.f32.mrb[4].mxu0 }
 0x102   : > { %v705_v43 = vadd.f32 %v1166_v38, %v698_v40  ;;  %v862_v44 = vadd.f32 %v861_v39, %v789_v42  ;;  %v1236_v45 = vpop.f32.mrb[5].mxu0 }
 0x103   : > { %v1011_v46 = vpop.f32.mrb[6].mxu1 }
 0x104   : > { %v707_v47 = vmul.f32 0.70710677, %v705_v43  ;;  %v1253_v48 = vpop.f32.mrb[7].mxu1  ;;  %v706_v56 = vmul.f32 0.5, %v705_v43 }
 0x105   : > { %v934_v49 = vpop.f32.mrb[6].mxu0 }
 0x106   : > { %1343 = verf.f32 %v707_v47  ;;  %v938_v50 = vadd.f32 %v934_v49, %v862_v44  ;;  %v1248_v51 = vpop.f32.mrb[7].mxu0 }
 0x108   : > { %v1015_v52 = vadd.f32 %v1011_v46, %v938_v50 }
 0x10a   : > { %v1016_v53 = vadd.f32 %v1166_v38, %v1015_v52 }
 0x10c   : > { %v1018_v54 = vmul.f32 0.70710677, %v1016_v53  ;;  %v1017_v60 = vmul.f32 0.5, %v1016_v53 }
 0x10e   : > { %1345 = verf.f32 %v1018_v54 }
 0x110   : > { %v1344_v55 = vpop.eup %1343 }
 0x111   : > { %v709_v57 = vadd.f32 1.0, %v1344_v55 }
 0x113   : > { %v710_v58 = vmul.f32 %v709_v57, %v706_v56 }
 0x115   : > { %711 = vst [vmem:[%s348_s2] sm:$0xff] %v710_v58 }
 0x118   : > { %v1346_v59 = vpop.eup %1345 }
 0x119   : > { %v1020_v61 = vadd.f32 1.0, %v1346_v59 }
 0x11b   : > { %v1021_v62 = vmul.f32 %v1020_v61, %v1017_v60 }
 0x11d   : > { %1173 = vst [vmem:[%s348_s2 + $0x8] sm:$0xff] %v1021_v62 }
 0x11e   : > { %1360 = shalt.err (!%p1357_p9)
}
 0x11f   : > { %s1361_s13 = scalar_lea.hbm %s1636_s10, 256  ;;  %s1365_s2 = scalar_lea.hbm %s1699_s7, 2048 }
 0x120   : > { %p1362_p10 = scmp.ne.s32.totalorder %s1636_s10, %s1361_s13  ;;  %p1366_p13 = scmp.lt.u32.totalorder %s1636_s10, %s1699_s7 }
 0x121   : > { %p1367_p0 = scmp.lt.u32.totalorder %s1365_s2, %s1361_s13  ;;  %p1369_p2 = scmp.lt.u32.totalorder %s1361_s13, %s1636_s10 }
 0x122   : > { %p1363_p11 = pnand %p1362_p10, %p1540_p3 }
 0x123   : > { %p1368_p1 = por %p1367_p0, %p1366_p13 }
 0x124   : > { %p1364_p12 = pneg %p1363_p11 }
 0x125   : > { %p1370_p4 = por %p1369_p2, %p1368_p1 }
 0x127   : > { %p1371_p5 = pnand %p1370_p4, %p1364_p12 }
 0x129   : > { %1374 = shalt.err (!%p1371_p5)
}
 0x12a   : > { %s1447_s9 = smov 128   ;;  %s1448_s17 = smov 8  }
 0x12b   : > { %1267 = dma.vmem_to_hbm [thread:$0]  (%p1540_p3), %s1638_s22, 256, %s1636_s10, %s1640_s28, %s1447_s9, %s1447_s9, %s1448_s17  }
 0x12c PF: > { %p1273_p6 = scmp.ge.s32.totalorder %s1441_s8, 2  ;;  %s1055_s18 = sand.u32 1, %s1413_s24  }
 0x12d   : > { %s1056_s21 = scalar_lea.sflag [#allocation3], %s1055_s18 }
 0x12e   : > { %p1270_p7 = pnand %p1273_p6, %p1549_p8 }
 0x130   : > { %1408 = dma.done.wait (!%p1270_p7), %s1056_s21, 256  }
 0x131   : > { %1410 = vsyncadd (!%p1270_p7), %s1056_s21, 4294967040  ;;  %s20_s8 = sadd.s32 1, %s1441_s8   ;;  %s1706_s24 = smov %s1417_s25 }
 0x132   : > { %p17_p9 = scmp.ge.s32.totalorder %s20_s8, 10   ;;  %s1707_s25 = smov %s1421_s26 }
 0x133   : > { %s1708_s26 = smov %s1558_s19  ;;  %s1709_s27 = smov %s1433_s29 }
 0x134   : > { %s1710_s28 = smov %s1437_s30  ;;  %s1711_s29 = smov %s1714_s11 }
 0x135   : > { %s1712_s30 = smov %s1718_s12  ;;  %19 = sbr.rel (!%p17_p9) target bundleno = 8 (0x8), region = 88 }
 0x13c   :  { %1061 = vsyncpa [#allocation3], 1 }
 0x13d   :  { %1063 = vsyncpa [#allocation3 + $0x1], 1 }

</bundles_post_ra>
